<compile_context>
chip_gen: v7x
topology: tpu7x:2x2x1
jax: 0.10.0
libtpu: 0.0.40
codegen_flags: <defaults>
</compile_context>

<pallas_src>
import functools
import math

import jax
import jax.numpy as jnp
from jax.experimental import pallas as pl
from jax.experimental.pallas import tpu as pltpu


def gnn_rnn_kernel(x_ref, c_ref, h0_ref,
                   w1_ref, wg_ref, wgru_ref, w2_ref,
                   b1_ref, bg_ref, br_ref, bz_ref, bin_ref, bhn_ref, b2_ref,
                   q_ref, hout_ref, *, n_agents):
    A = n_agents
    TB, H = h0_ref.shape
    GS = wgru_ref.shape[1] // 4          # 128-lane-aligned GRU gate slot width
    mm_dtype = w1_ref.dtype              # bf16 (default) or f32
    f32 = jnp.float32

    def mm(a, w_ref):
        return jnp.dot(a, w_ref[...], preferred_element_type=f32)

    # ---- fc1 + relu (x already arrives in mm_dtype) -------------------------
    x = jnp.maximum(mm(x_ref[...], w1_ref) + b1_ref[...], 0.0)        # (TB,H) f32

    # ---- graph_conv linear ---------------------------------------------------
    hw = mm(x.astype(mm_dtype), wg_ref) + bg_ref[...]                 # (TB,H) f32

    # ---- group-local graph conv as a shifted weighted accumulate -------------
    # h_graph[r] = sum_s c[r, s+A-1] * hw[r+s],  s in [-(A-1), A-1].
    # Tiles are aligned to whole agent groups and c[r, :] is zero whenever r+s
    # leaves r's group, so neither cross-group rows nor the zero padding at the
    # tile edges are ever picked up.  All in f32 on the VPU.
    c = c_ref[...]                                                     # (TB, 2A-1) f32
    if A > 1:
        pad = jnp.zeros((A - 1, H), f32)
        hw_pad = jnp.concatenate([pad, hw, pad], axis=0)               # (TB+2A-2, H)
        h_graph = c[:, 0:1] * hw_pad[0:TB, :]
        for si in range(1, 2 * A - 1):                                 # static unroll, A small
            h_graph = h_graph + c[:, si:si + 1] * hw_pad[si:si + TB, :]
    else:
        h_graph = c[:, 0:1] * hw
    h = jnp.maximum(h_graph, 0.0) + x                                  # residual (TB,H) f32

    # ---- GRUCell: one fused MXU matmul over 128-lane gate slots --------------
    h_in = h0_ref[...]                                                 # (TB,H) f32
    lhs = jnp.concatenate([h, h_in], axis=-1).astype(mm_dtype)         # (TB,2H), cast once
    gates = jnp.dot(lhs, wgru_ref[...], preferred_element_type=f32)    # (TB,4*GS)
    # Slot starts are multiples of GS (>=128) and slices are offset-0 within
    # their slot, so no cross-lane shuffles are needed.
    r = jax.nn.sigmoid(gates[:, 0:H] + br_ref[...])
    z = jax.nn.sigmoid(gates[:, GS:GS + H] + bz_ref[...])
    n = jnp.tanh(gates[:, 2 * GS:2 * GS + H] + bin_ref[...]
                 + r * (gates[:, 3 * GS:3 * GS + H] + bhn_ref[...]))
    h_out = (1.0 - z) * n + z * h_in

    hout_ref[...] = h_out
    # fc2 into a lane-dense (128-lane padded) output, written in mm_dtype.
    q_ref[...] = (mm(h_out.astype(mm_dtype), w2_ref)
                  + b2_ref[...]).astype(q_ref.dtype)


def _round_up(x, m):
    return ((x + m - 1) // m) * m


def _pick_tile(B, A, max_tile=1024):
    """Largest row tile <= max_tile dividing B that contains whole agent groups
    (multiple of A) on sublane boundaries (multiple of 8).  Prefers a tile that
    yields >= 2 grid steps so the 'parallel' batch axis can shard across v7x's
    two TensorCores."""
    base = (A * 8) // math.gcd(A, 8)
    cands = [t for t in range(base, min(B, max_tile) + 1, base) if B % t == 0]
    multi = [t for t in cands if t < B]
    if multi:
        return max(multi)
    if cands:
        return max(cands)
    return B                              # no aligned divisor: single full tile


@functools.partial(jax.jit, static_argnames=("n_agents", "matmul_dtype", "tile"))
def gnn_rnn_forward(params, inputs, adj, hidden_state, *, n_agents,
                    matmul_dtype=jnp.bfloat16, tile=None):
    """inputs: (B, D_in), adj: (bs, A, A), hidden_state: (B, H); B = bs * A."""
    B, d_in = inputs.shape
    H = params["w1"].shape[1]
    n_actions = params["w2"].shape[1]
    A = n_agents
    assert B % A == 0, "batch must contain whole agent groups"
    bs = B // A

    if tile is None:
        tile = _pick_tile(B, A)
    assert B % tile == 0 and tile % A == 0 and (tile % 8 == 0 or tile == B)

    GS = _round_up(max(H, 128), 128)             # 128-lane-aligned GRU gate slot
    NQ = _round_up(max(n_actions, 128), 128)     # lane-dense q output width
    S = 2 * A - 1                                # shift-coefficient columns
    f32 = jnp.float32

    # ---- one-time parameter massaging (layout only, outside the kernel) -----
    w1 = params["w1"].astype(matmul_dtype)
    wg = params["wg"].astype(matmul_dtype)

    # Fused GRU weight: rows = [h ; h_in], 4 gate slots of GS lanes each:
    #   slot0 = [Wir ; Whr], slot1 = [Wiz ; Whz], slot2 = [Win ; 0], slot3 = [0 ; Whn]
    wih, whh = params["wih"].astype(f32), params["whh"].astype(f32)
    wgru = jnp.zeros((2 * H, 4 * GS), f32)
    wgru = wgru.at[:H, 0:H].set(wih[:, :H]).at[H:, 0:H].set(whh[:, :H])
    wgru = (wgru.at[:H, GS:GS + H].set(wih[:, H:2 * H])
                .at[H:, GS:GS + H].set(whh[:, H:2 * H]))
    wgru = wgru.at[:H, 2 * GS:2 * GS + H].set(wih[:, 2 * H:])
    wgru = wgru.at[H:, 3 * GS:3 * GS + H].set(whh[:, 2 * H:])
    wgru = wgru.astype(matmul_dtype)

    b1 = params["b1"].astype(f32)
    bg = params["bg"].astype(f32)
    bih, bhh = params["bih"].astype(f32), params["bhh"].astype(f32)
    br = bih[:, :H] + bhh[:, :H]
    bz = bih[:, H:2 * H] + bhh[:, H:2 * H]
    bin_ = bih[:, 2 * H:]
    bhn = bhh[:, 2 * H:]

    w2 = jnp.zeros((H, NQ), matmul_dtype).at[:, :n_actions].set(
        params["w2"].astype(matmul_dtype))
    b2 = jnp.zeros((1, NQ), f32).at[:, :n_actions].set(params["b2"].astype(f32))

    # ---- adjacency -> per-row shift coefficients (B, 2A-1), built in f32 ----
    # c[g*A + a, s + A-1] = norm_adj[g, a, a+s] if 0 <= a+s < A else 0
    adj = adj.astype(f32)
    norm_adj = adj / (adj.sum(-1, keepdims=True) + 1e-10)              # (bs,A,A)
    dest = jnp.arange(A)[:, None]                                      # (A,1)
    shift = jnp.arange(S)[None, :] - (A - 1)                           # (1,S)
    src = dest + shift                                                 # (A,S)
    valid = (src >= 0) & (src < A)
    gathered = jnp.take_along_axis(
        norm_adj,
        jnp.broadcast_to(jnp.clip(src, 0, A - 1)[None], (bs, A, S)),
        axis=2)                                                        # (bs,A,S)
    c = jnp.where(valid[None], gathered, 0.0).reshape(B, S)

    grid = (B // tile,)
    row = lambda i: (i, 0)        # per-step batch tile
    const = lambda i: (0, 0)      # VMEM-resident weights/biases
    rspec = lambda cols: pl.BlockSpec((tile, cols), row)
    wspec = lambda shape: pl.BlockSpec(shape, const)

    q_pad, h_out = pl.pallas_call(
        functools.partial(gnn_rnn_kernel, n_agents=A),
        grid=grid,
        in_specs=[
            rspec(d_in), rspec(S), rspec(H),                    # x, c, h0
            wspec((d_in, H)), wspec((H, H)),                    # w1, wg
            wspec((2 * H, 4 * GS)), wspec((H, NQ)),             # wgru (fused), w2
            wspec((1, H)), wspec((1, H)),                       # b1, bg
            wspec((1, H)), wspec((1, H)),                       # br, bz
            wspec((1, H)), wspec((1, H)),                       # bin, bhn
            wspec((1, NQ)),                                     # b2 (lane-padded)
        ],
        out_specs=(rspec(NQ), rspec(H)),
        out_shape=(jax.ShapeDtypeStruct((B, NQ), matmul_dtype),
                   jax.ShapeDtypeStruct((B, H), f32)),
        input_output_aliases={2: 1},     # hidden_state buffer -> h_out (in place)
        compiler_params=pltpu.CompilerParams(
            dimension_semantics=("parallel",)),
    )(inputs.astype(matmul_dtype), c, hidden_state.astype(f32),
      w1, wg, wgru, w2, b1, bg, br, bz, bin_, bhn, b2)

    return q_pad[:, :n_actions], h_out


def reference_forward(params, inputs, adj, hidden_state, n_agents):
    """Pure-JAX f32 mirror of the (intended) PyTorch forward, for verification."""
    B = inputs.shape[0]
    H = params["w1"].shape[1]
    bs = B // n_agents
    x = jnp.maximum(inputs @ params["w1"] + params["b1"], 0.0)
    hw = (x @ params["wg"] + params["bg"]).reshape(bs, n_agents, H)
    norm_adj = adj / (adj.sum(-1, keepdims=True) + 1e-10)
    hg = jnp.maximum(jnp.einsum("bij,bjd->bid", norm_adj, hw), 0.0).reshape(B, H)
    h = hg + x
    gi = h @ params["wih"] + params["bih"]
    gh = hidden_state @ params["whh"] + params["bhh"]
    r = jax.nn.sigmoid(gi[:, :H] + gh[:, :H])
    z = jax.nn.sigmoid(gi[:, H:2 * H] + gh[:, H:2 * H])
    n = jnp.tanh(gi[:, 2 * H:] + r * gh[:, 2 * H:])
    h_out = (1.0 - z) * n + z * hidden_state
    q = h_out @ params["w2"] + params["b2"]
    return q, h_out


def init_params(key, d_in, hidden, n_actions):
    """PyTorch-style uniform(-1/sqrt(fan_in), 1/sqrt(fan_in)) init.
    All weights stored transposed as (in_features, out_features)."""
    ks = jax.random.split(key, 10)

    def u(k, shape, fan_in):
        bound = 1.0 / jnp.sqrt(jnp.float32(fan_in))
        return jax.random.uniform(k, shape, jnp.float32, -bound, bound)

    return dict(
        w1=u(ks[0], (d_in, hidden), d_in),        b1=u(ks[1], (1, hidden), d_in),
        wg=u(ks[2], (hidden, hidden), hidden),    bg=u(ks[3], (1, hidden), hidden),
        wih=u(ks[4], (hidden, 3 * hidden), hidden),
        bih=u(ks[5], (1, 3 * hidden), hidden),
        whh=u(ks[6], (hidden, 3 * hidden), hidden),
        bhh=u(ks[7], (1, 3 * hidden), hidden),
        w2=u(ks[8], (hidden, n_actions), hidden), b2=u(ks[9], (1, n_actions), hidden),
    )


if __name__ == "__main__":
    key = jax.random.PRNGKey(0)
    k_p, k_x, k_a, k_h, k_x2, k_a2, k_h2 = jax.random.split(key, 7)

    d_in, hidden, n_actions = 32, 32, 8
    params = init_params(k_p, d_in, hidden, n_actions)

    # --- case 1: small (bs=2, n_agents=4), single grid step -------------------
    bs, A = 2, 4
    B = bs * A
    inputs = jax.random.normal(k_x, (B, d_in), jnp.float32)
    adj = jax.random.uniform(k_a, (bs, A, A), jnp.float32)        # nonneg adjacency
    hidden_state = 0.1 * jax.random.normal(k_h, (B, hidden), jnp.float32)

    q_ref, h_ref = reference_forward(params, inputs, adj, hidden_state, A)

    # exact-semantics check: f32 matmuls
    q32, h32 = gnn_rnn_forward(params, inputs, adj, hidden_state,
                               n_agents=A, matmul_dtype=jnp.float32)
    q32, h32 = jax.block_until_ready(q32), jax.block_until_ready(h32)
    assert q32.shape == (B, n_actions) and h32.shape == (B, hidden)
    assert jnp.allclose(q32, q_ref, atol=1e-4, rtol=1e-4)
    assert jnp.allclose(h32, h_ref, atol=1e-4, rtol=1e-4)

    # default fast path: bf16 matmuls / bf16 q, f32 accumulation & elementwise
    qbf, hbf = gnn_rnn_forward(params, inputs, adj, hidden_state, n_agents=A)
    qbf, hbf = jax.block_until_ready(qbf), jax.block_until_ready(hbf)
    assert jnp.allclose(qbf.astype(jnp.float32), q_ref, atol=5e-2, rtol=5e-2)
    assert jnp.allclose(hbf, h_ref, atol=5e-2, rtol=5e-2)

    # --- case 2: larger batch; auto tile (>=2 grid steps) and forced tile=16 --
    bs2 = 16
    B2 = bs2 * A
    inputs2 = jax.random.normal(k_x2, (B2, d_in), jnp.float32)
    adj2 = jax.random.uniform(k_a2, (bs2, A, A), jnp.float32)
    hidden2 = 0.1 * jax.random.normal(k_h2, (B2, hidden), jnp.float32)

    q2_ref, h2_ref = reference_forward(params, inputs2, adj2, hidden2, A)

    q2a, h2a = gnn_rnn_forward(params, inputs2, adj2, hidden2,
                               n_agents=A, matmul_dtype=jnp.float32)  # auto tile -> 2 steps
    q2a, h2a = jax.block_until_ready(q2a), jax.block_until_ready(h2a)
    assert jnp.allclose(q2a, q2_ref, atol=1e-4, rtol=1e-4)
    assert jnp.allclose(h2a, h2_ref, atol=1e-4, rtol=1e-4)

    q2, h2 = gnn_rnn_forward(params, inputs2, adj2, hidden2,
                             n_agents=A, matmul_dtype=jnp.float32, tile=16)
    q2, h2 = jax.block_until_ready(q2), jax.block_until_ready(h2)
    assert jnp.allclose(q2, q2_ref, atol=1e-4, rtol=1e-4)
    assert jnp.allclose(h2, h2_ref, atol=1e-4, rtol=1e-4)

    print("KERNEL_OK")
</pallas_src>

<mosaic_0001>
module attributes {stable_mosaic.version = 11 : i64} {
  func.func @gnn_rnn_kernel(%arg0: i32, %arg1: memref<8x32xf32, #tpu.memory_space<vmem>>, %arg2: memref<8x7xf32, #tpu.memory_space<vmem>>, %arg3: memref<8x32xf32, #tpu.memory_space<vmem>>, %arg4: memref<32x32xf32, #tpu.memory_space<vmem>>, %arg5: memref<32x32xf32, #tpu.memory_space<vmem>>, %arg6: memref<64x512xf32, #tpu.memory_space<vmem>>, %arg7: memref<32x128xf32, #tpu.memory_space<vmem>>, %arg8: memref<1x32xf32, #tpu.memory_space<vmem>>, %arg9: memref<1x32xf32, #tpu.memory_space<vmem>>, %arg10: memref<1x32xf32, #tpu.memory_space<vmem>>, %arg11: memref<1x32xf32, #tpu.memory_space<vmem>>, %arg12: memref<1x32xf32, #tpu.memory_space<vmem>>, %arg13: memref<1x32xf32, #tpu.memory_space<vmem>>, %arg14: memref<1x128xf32, #tpu.memory_space<vmem>>, %arg15: memref<8x128xf32, #tpu.memory_space<vmem>>, %arg16: memref<8x32xf32, #tpu.memory_space<vmem>>) attributes {dimension_semantics = [#tpu.dimension_semantics<parallel>], iteration_bounds = array<i64: 1>, scalar_prefetch = 0 : i64, scratch_operands = 0 : i64, tpu.core_type = #tpu.core_type<tc>, window_params = [{transform_indices = @transform_0, window_bounds = array<i64: 8, 32>}, {transform_indices = @transform_1, window_bounds = array<i64: 8, 7>}, {transform_indices = @transform_2, window_bounds = array<i64: 8, 32>}, {pipeline_mode = #tpu.pipeline_mode<synchronous>, transform_indices = @transform_3, window_bounds = array<i64: 32, 32>}, {pipeline_mode = #tpu.pipeline_mode<synchronous>, transform_indices = @transform_4, window_bounds = array<i64: 32, 32>}, {pipeline_mode = #tpu.pipeline_mode<synchronous>, transform_indices = @transform_5, window_bounds = array<i64: 64, 512>}, {pipeline_mode = #tpu.pipeline_mode<synchronous>, transform_indices = @transform_6, window_bounds = array<i64: 32, 128>}, {pipeline_mode = #tpu.pipeline_mode<synchronous>, transform_indices = @transform_7, window_bounds = array<i64: 1, 32>}, {pipeline_mode = #tpu.pipeline_mode<synchronous>, transform_indices = @transform_8, window_bounds = array<i64: 1, 32>}, {pipeline_mode = #tpu.pipeline_mode<synchronous>, transform_indices = @transform_9, window_bounds = array<i64: 1, 32>}, {pipeline_mode = #tpu.pipeline_mode<synchronous>, transform_indices = @transform_10, window_bounds = array<i64: 1, 32>}, {pipeline_mode = #tpu.pipeline_mode<synchronous>, transform_indices = @transform_11, window_bounds = array<i64: 1, 32>}, {pipeline_mode = #tpu.pipeline_mode<synchronous>, transform_indices = @transform_12, window_bounds = array<i64: 1, 32>}, {pipeline_mode = #tpu.pipeline_mode<synchronous>, transform_indices = @transform_13, window_bounds = array<i64: 1, 128>}, {transform_indices = @transform_14, window_bounds = array<i64: 8, 128>}, {transform_indices = @transform_15, window_bounds = array<i64: 8, 32>}]} {
    %c0 = arith.constant 0 : index
    %c0_0 = arith.constant 0 : index
    %0 = vector.load %arg1[%c0, %c0_0] : memref<8x32xf32, #tpu.memory_space<vmem>>, vector<8x32xf32>
    %c0_1 = arith.constant 0 : index
    %c0_2 = arith.constant 0 : index
    %1 = vector.load %arg4[%c0_1, %c0_2] : memref<32x32xf32, #tpu.memory_space<vmem>>, vector<32x32xf32>
    %cst = arith.constant dense<0.000000e+00> : vector<8x32xf32>
    %2 = tpu.matmul %0, %1, %cst {dimension_numbers = #tpu.dot_dimension_numbers<[1], [0], [0], [1], [0, 0, 1, 1], [], []>} : vector<8x32xf32>, vector<32x32xf32>, vector<8x32xf32> -> vector<8x32xf32>
    %c0_3 = arith.constant 0 : index
    %c0_4 = arith.constant 0 : index
    %3 = vector.load %arg8[%c0_3, %c0_4] : memref<1x32xf32, #tpu.memory_space<vmem>>, vector<1x32xf32>
    %4 = vector.broadcast %3 : vector<1x32xf32> to vector<8x32xf32>
    %5 = arith.addf %2, %4 : vector<8x32xf32>
    %cst_5 = arith.constant 0.000000e+00 : f32
    %6 = vector.broadcast %cst_5 : f32 to vector<8x32xf32>
    %7 = arith.maximumf %5, %6 : vector<8x32xf32>
    %c0_6 = arith.constant 0 : index
    %c0_7 = arith.constant 0 : index
    %8 = vector.load %arg5[%c0_6, %c0_7] : memref<32x32xf32, #tpu.memory_space<vmem>>, vector<32x32xf32>
    %cst_8 = arith.constant dense<0.000000e+00> : vector<8x32xf32>
    %9 = tpu.matmul %7, %8, %cst_8 {dimension_numbers = #tpu.dot_dimension_numbers<[1], [0], [0], [1], [0, 0, 1, 1], [], []>} : vector<8x32xf32>, vector<32x32xf32>, vector<8x32xf32> -> vector<8x32xf32>
    %c0_9 = arith.constant 0 : index
    %c0_10 = arith.constant 0 : index
    %10 = vector.load %arg9[%c0_9, %c0_10] : memref<1x32xf32, #tpu.memory_space<vmem>>, vector<1x32xf32>
    %11 = vector.broadcast %10 : vector<1x32xf32> to vector<8x32xf32>
    %12 = arith.addf %9, %11 : vector<8x32xf32>
    %c0_11 = arith.constant 0 : index
    %c0_12 = arith.constant 0 : index
    %13 = vector.load %arg2[%c0_11, %c0_12] : memref<8x7xf32, #tpu.memory_space<vmem>>, vector<8x7xf32>
    %cst_13 = arith.constant 0.000000e+00 : f32
    %14 = vector.broadcast %cst_13 : f32 to vector<3x32xf32>
    %15 = tpu.concatenate %14, %12, %14 in 0 : vector<3x32xf32>, vector<8x32xf32>, vector<3x32xf32> -> vector<14x32xf32>
    %16 = vector.extract_strided_slice %13 {offsets = [0, 0], sizes = [8, 1], strides = [1, 1]} : vector<8x7xf32> to vector<8x1xf32>
    %17 = vector.extract_strided_slice %15 {offsets = [0, 0], sizes = [8, 32], strides = [1, 1]} : vector<14x32xf32> to vector<8x32xf32>
    %18 = vector.broadcast %16 : vector<8x1xf32> to vector<8x32xf32>
    %19 = arith.mulf %18, %17 : vector<8x32xf32>
    %20 = vector.extract_strided_slice %13 {offsets = [0, 1], sizes = [8, 1], strides = [1, 1]} : vector<8x7xf32> to vector<8x1xf32>
    %21 = vector.extract_strided_slice %15 {offsets = [1, 0], sizes = [8, 32], strides = [1, 1]} : vector<14x32xf32> to vector<8x32xf32>
    %22 = vector.broadcast %20 : vector<8x1xf32> to vector<8x32xf32>
    %23 = arith.mulf %22, %21 : vector<8x32xf32>
    %24 = arith.addf %19, %23 : vector<8x32xf32>
    %25 = vector.extract_strided_slice %13 {offsets = [0, 2], sizes = [8, 1], strides = [1, 1]} : vector<8x7xf32> to vector<8x1xf32>
    %26 = vector.extract_strided_slice %15 {offsets = [2, 0], sizes = [8, 32], strides = [1, 1]} : vector<14x32xf32> to vector<8x32xf32>
    %27 = vector.broadcast %25 : vector<8x1xf32> to vector<8x32xf32>
    %28 = arith.mulf %27, %26 : vector<8x32xf32>
    %29 = arith.addf %24, %28 : vector<8x32xf32>
    %30 = vector.extract_strided_slice %13 {offsets = [0, 3], sizes = [8, 1], strides = [1, 1]} : vector<8x7xf32> to vector<8x1xf32>
    %31 = vector.extract_strided_slice %15 {offsets = [3, 0], sizes = [8, 32], strides = [1, 1]} : vector<14x32xf32> to vector<8x32xf32>
    %32 = vector.broadcast %30 : vector<8x1xf32> to vector<8x32xf32>
    %33 = arith.mulf %32, %31 : vector<8x32xf32>
    %34 = arith.addf %29, %33 : vector<8x32xf32>
    %35 = vector.extract_strided_slice %13 {offsets = [0, 4], sizes = [8, 1], strides = [1, 1]} : vector<8x7xf32> to vector<8x1xf32>
    %36 = vector.extract_strided_slice %15 {offsets = [4, 0], sizes = [8, 32], strides = [1, 1]} : vector<14x32xf32> to vector<8x32xf32>
    %37 = vector.broadcast %35 : vector<8x1xf32> to vector<8x32xf32>
    %38 = arith.mulf %37, %36 : vector<8x32xf32>
    %39 = arith.addf %34, %38 : vector<8x32xf32>
    %40 = vector.extract_strided_slice %13 {offsets = [0, 5], sizes = [8, 1], strides = [1, 1]} : vector<8x7xf32> to vector<8x1xf32>
    %41 = vector.extract_strided_slice %15 {offsets = [5, 0], sizes = [8, 32], strides = [1, 1]} : vector<14x32xf32> to vector<8x32xf32>
    %42 = vector.broadcast %40 : vector<8x1xf32> to vector<8x32xf32>
    %43 = arith.mulf %42, %41 : vector<8x32xf32>
    %44 = arith.addf %39, %43 : vector<8x32xf32>
    %45 = vector.extract_strided_slice %13 {offsets = [0, 6], sizes = [8, 1], strides = [1, 1]} : vector<8x7xf32> to vector<8x1xf32>
    %46 = vector.extract_strided_slice %15 {offsets = [6, 0], sizes = [8, 32], strides = [1, 1]} : vector<14x32xf32> to vector<8x32xf32>
    %47 = vector.broadcast %45 : vector<8x1xf32> to vector<8x32xf32>
    %48 = arith.mulf %47, %46 : vector<8x32xf32>
    %49 = arith.addf %44, %48 : vector<8x32xf32>
    %cst_14 = arith.constant 0.000000e+00 : f32
    %50 = vector.broadcast %cst_14 : f32 to vector<8x32xf32>
    %51 = arith.maximumf %49, %50 : vector<8x32xf32>
    %52 = arith.addf %51, %7 : vector<8x32xf32>
    %c0_15 = arith.constant 0 : index
    %c0_16 = arith.constant 0 : index
    %53 = vector.load %arg3[%c0_15, %c0_16] : memref<8x32xf32, #tpu.memory_space<vmem>>, vector<8x32xf32>
    %54 = tpu.concatenate %52, %53 in 1 : vector<8x32xf32>, vector<8x32xf32> -> vector<8x64xf32>
    %c0_17 = arith.constant 0 : index
    %c0_18 = arith.constant 0 : index
    %55 = vector.load %arg6[%c0_17, %c0_18] : memref<64x512xf32, #tpu.memory_space<vmem>>, vector<64x512xf32>
    %cst_19 = arith.constant dense<0.000000e+00> : vector<8x512xf32>
    %56 = tpu.matmul %54, %55, %cst_19 {dimension_numbers = #tpu.dot_dimension_numbers<[1], [0], [0], [1], [0, 0, 1, 1], [], []>} : vector<8x64xf32>, vector<64x512xf32>, vector<8x512xf32> -> vector<8x512xf32>
    %57 = vector.extract_strided_slice %56 {offsets = [0, 0], sizes = [8, 32], strides = [1, 1]} : vector<8x512xf32> to vector<8x32xf32>
    %c0_20 = arith.constant 0 : index
    %c0_21 = arith.constant 0 : index
    %58 = vector.load %arg10[%c0_20, %c0_21] : memref<1x32xf32, #tpu.memory_space<vmem>>, vector<1x32xf32>
    %59 = vector.broadcast %58 : vector<1x32xf32> to vector<8x32xf32>
    %60 = arith.addf %57, %59 : vector<8x32xf32>
    %61 = arith.negf %60 : vector<8x32xf32>
    %62 = math.exp %61 : vector<8x32xf32>
    %cst_22 = arith.constant 1.000000e+00 : f32
    %63 = vector.broadcast %cst_22 : f32 to vector<8x32xf32>
    %64 = arith.addf %63, %62 : vector<8x32xf32>
    %65 = arith.divf %63, %64 : vector<8x32xf32>
    %66 = vector.extract_strided_slice %56 {offsets = [0, 128], sizes = [8, 32], strides = [1, 1]} : vector<8x512xf32> to vector<8x32xf32>
    %c0_23 = arith.constant 0 : index
    %c0_24 = arith.constant 0 : index
    %67 = vector.load %arg11[%c0_23, %c0_24] : memref<1x32xf32, #tpu.memory_space<vmem>>, vector<1x32xf32>
    %68 = vector.broadcast %67 : vector<1x32xf32> to vector<8x32xf32>
    %69 = arith.addf %66, %68 : vector<8x32xf32>
    %70 = arith.negf %69 : vector<8x32xf32>
    %71 = math.exp %70 : vector<8x32xf32>
    %cst_25 = arith.constant 1.000000e+00 : f32
    %72 = vector.broadcast %cst_25 : f32 to vector<8x32xf32>
    %73 = arith.addf %72, %71 : vector<8x32xf32>
    %74 = arith.divf %72, %73 : vector<8x32xf32>
    %75 = vector.extract_strided_slice %56 {offsets = [0, 256], sizes = [8, 32], strides = [1, 1]} : vector<8x512xf32> to vector<8x32xf32>
    %c0_26 = arith.constant 0 : index
    %c0_27 = arith.constant 0 : index
    %76 = vector.load %arg12[%c0_26, %c0_27] : memref<1x32xf32, #tpu.memory_space<vmem>>, vector<1x32xf32>
    %77 = vector.broadcast %76 : vector<1x32xf32> to vector<8x32xf32>
    %78 = arith.addf %75, %77 : vector<8x32xf32>
    %79 = vector.extract_strided_slice %56 {offsets = [0, 384], sizes = [8, 32], strides = [1, 1]} : vector<8x512xf32> to vector<8x32xf32>
    %c0_28 = arith.constant 0 : index
    %c0_29 = arith.constant 0 : index
    %80 = vector.load %arg13[%c0_28, %c0_29] : memref<1x32xf32, #tpu.memory_space<vmem>>, vector<1x32xf32>
    %81 = vector.broadcast %80 : vector<1x32xf32> to vector<8x32xf32>
    %82 = arith.addf %79, %81 : vector<8x32xf32>
    %83 = arith.mulf %65, %82 : vector<8x32xf32>
    %84 = arith.addf %78, %83 : vector<8x32xf32>
    %85 = math.tanh %84 : vector<8x32xf32>
    %cst_30 = arith.constant 1.000000e+00 : f32
    %86 = vector.broadcast %cst_30 : f32 to vector<8x32xf32>
    %87 = arith.subf %86, %74 : vector<8x32xf32>
    %88 = arith.mulf %87, %85 : vector<8x32xf32>
    %89 = arith.mulf %74, %53 : vector<8x32xf32>
    %90 = arith.addf %88, %89 : vector<8x32xf32>
    %c0_31 = arith.constant 0 : index
    %c0_32 = arith.constant 0 : index
    %91 = vector.load %arg16[%c0_31, %c0_32] : memref<8x32xf32, #tpu.memory_space<vmem>>, vector<8x32xf32>
    tpu.vector_store %arg16[%c0_31, %c0_32], %90 {strides = array<i32>} : memref<8x32xf32, #tpu.memory_space<vmem>>, vector<8x32xf32>,
    %c0_33 = arith.constant 0 : index
    %c0_34 = arith.constant 0 : index
    %92 = vector.load %arg7[%c0_33, %c0_34] : memref<32x128xf32, #tpu.memory_space<vmem>>, vector<32x128xf32>
    %cst_35 = arith.constant dense<0.000000e+00> : vector<8x128xf32>
    %93 = tpu.matmul %90, %92, %cst_35 {dimension_numbers = #tpu.dot_dimension_numbers<[1], [0], [0], [1], [0, 0, 1, 1], [], []>} : vector<8x32xf32>, vector<32x128xf32>, vector<8x128xf32> -> vector<8x128xf32>
    %c0_36 = arith.constant 0 : index
    %c0_37 = arith.constant 0 : index
    %94 = vector.load %arg14[%c0_36, %c0_37] : memref<1x128xf32, #tpu.memory_space<vmem>>, vector<1x128xf32>
    %95 = vector.broadcast %94 : vector<1x128xf32> to vector<8x128xf32>
    %96 = arith.addf %93, %95 : vector<8x128xf32>
    %c0_38 = arith.constant 0 : index
    %c0_39 = arith.constant 0 : index
    %97 = vector.load %arg15[%c0_38, %c0_39] : memref<8x128xf32, #tpu.memory_space<vmem>>, vector<8x128xf32>
    tpu.vector_store %arg15[%c0_38, %c0_39], %96 {strides = array<i32>} : memref<8x128xf32, #tpu.memory_space<vmem>>, vector<8x128xf32>,
    return
  }
  func.func @transform_0(%arg0: i32) -> (i32, i32) {
    %c0_i32 = arith.constant 0 : i32
    %c0_i32_0 = arith.constant 0 : i32
    return %arg0, %c0_i32 : i32, i32
  }
  func.func @transform_1(%arg0: i32) -> (i32, i32) {
    %c0_i32 = arith.constant 0 : i32
    %c0_i32_0 = arith.constant 0 : i32
    return %arg0, %c0_i32 : i32, i32
  }
  func.func @transform_2(%arg0: i32) -> (i32, i32) {
    %c0_i32 = arith.constant 0 : i32
    %c0_i32_0 = arith.constant 0 : i32
    return %arg0, %c0_i32 : i32, i32
  }
  func.func @transform_3(%arg0: i32) -> (i32, i32) {
    %c0_i32 = arith.constant 0 : i32
    %c0_i32_0 = arith.constant 0 : i32
    %c0_i32_1 = arith.constant 0 : i32
    return %c0_i32, %c0_i32_0 : i32, i32
  }
  func.func @transform_4(%arg0: i32) -> (i32, i32) {
    %c0_i32 = arith.constant 0 : i32
    %c0_i32_0 = arith.constant 0 : i32
    %c0_i32_1 = arith.constant 0 : i32
    return %c0_i32, %c0_i32_0 : i32, i32
  }
  func.func @transform_5(%arg0: i32) -> (i32, i32) {
    %c0_i32 = arith.constant 0 : i32
    %c0_i32_0 = arith.constant 0 : i32
    %c0_i32_1 = arith.constant 0 : i32
    return %c0_i32, %c0_i32_0 : i32, i32
  }
  func.func @transform_6(%arg0: i32) -> (i32, i32) {
    %c0_i32 = arith.constant 0 : i32
    %c0_i32_0 = arith.constant 0 : i32
    %c0_i32_1 = arith.constant 0 : i32
    return %c0_i32, %c0_i32_0 : i32, i32
  }
  func.func @transform_7(%arg0: i32) -> (i32, i32) {
    %c0_i32 = arith.constant 0 : i32
    %c0_i32_0 = arith.constant 0 : i32
    %c0_i32_1 = arith.constant 0 : i32
    return %c0_i32, %c0_i32_0 : i32, i32
  }
  func.func @transform_8(%arg0: i32) -> (i32, i32) {
    %c0_i32 = arith.constant 0 : i32
    %c0_i32_0 = arith.constant 0 : i32
    %c0_i32_1 = arith.constant 0 : i32
    return %c0_i32, %c0_i32_0 : i32, i32
  }
  func.func @transform_9(%arg0: i32) -> (i32, i32) {
    %c0_i32 = arith.constant 0 : i32
    %c0_i32_0 = arith.constant 0 : i32
    %c0_i32_1 = arith.constant 0 : i32
    return %c0_i32, %c0_i32_0 : i32, i32
  }
  func.func @transform_10(%arg0: i32) -> (i32, i32) {
    %c0_i32 = arith.constant 0 : i32
    %c0_i32_0 = arith.constant 0 : i32
    %c0_i32_1 = arith.constant 0 : i32
    return %c0_i32, %c0_i32_0 : i32, i32
  }
  func.func @transform_11(%arg0: i32) -> (i32, i32) {
    %c0_i32 = arith.constant 0 : i32
    %c0_i32_0 = arith.constant 0 : i32
    %c0_i32_1 = arith.constant 0 : i32
    return %c0_i32, %c0_i32_0 : i32, i32
  }
  func.func @transform_12(%arg0: i32) -> (i32, i32) {
    %c0_i32 = arith.constant 0 : i32
    %c0_i32_0 = arith.constant 0 : i32
    %c0_i32_1 = arith.constant 0 : i32
    return %c0_i32, %c0_i32_0 : i32, i32
  }
  func.func @transform_13(%arg0: i32) -> (i32, i32) {
    %c0_i32 = arith.constant 0 : i32
    %c0_i32_0 = arith.constant 0 : i32
    %c0_i32_1 = arith.constant 0 : i32
    return %c0_i32, %c0_i32_0 : i32, i32
  }
  func.func @transform_14(%arg0: i32) -> (i32, i32) {
    %c0_i32 = arith.constant 0 : i32
    %c0_i32_0 = arith.constant 0 : i32
    return %arg0, %c0_i32 : i32, i32
  }
  func.func @transform_15(%arg0: i32) -> (i32, i32) {
    %c0_i32 = arith.constant 0 : i32
    %c0_i32_0 = arith.constant 0 : i32
    return %arg0, %c0_i32 : i32, i32
  }
}

</mosaic_0001>

<bundles_post_ra>
// kernel: gnn_rnn_forward.1
= control target key start
LH: loop header
LB: loop body
LE: loop exit
PB: predicated region body
PF: predicated region fallthrough
CT: control target
= control target key end

     0   :  { %v808_v3 = vmov 0.0|0.0   ;;  %vm809_vm0 = vmmov 0   ;;  %v810_v6 = vmov 0.0   ;;  %s1110_s0 = inlined_call_operand.vmem [shape: f32[8,32], index: 0, kind: input, shape index: {}]   ;;  %s1111_s1 = inlined_call_operand.vmem [shape: f32[8,7], index: 1, kind: input, shape index: {}]   ;;  %s1112_s2 = inlined_call_operand.vmem [shape: f32[8,32], index: 2, kind: input, shape index: {}, may-alias: {2,15}]   ;;  %s1113_s3 = inlined_call_operand.vmem [shape: f32[32,32], index: 3, kind: input, shape index: {}]   ;;  %s1114_s4 = inlined_call_operand.vmem [shape: f32[32,32], index: 4, kind: input, shape index: {}]   ;;  %s1115_s5 = inlined_call_operand.vmem [shape: f32[64,512], index: 5, kind: input, shape index: {}]   ;;  %s1116_s6 = inlined_call_operand.vmem [shape: f32[32,128], index: 6, kind: input, shape index: {}]   ;;  %s1117_s7 = inlined_call_operand.vmem [shape: f32[1,32], index: 7, kind: input, shape index: {}]   ;;  %s1118_s8 = inlined_call_operand.vmem [shape: f32[1,32], index: 8, kind: input, shape index: {}]   ;;  %s1119_s9 = inlined_call_operand.vmem [shape: f32[1,32], index: 9, kind: input, shape index: {}]   ;;  %s1120_s10 = inlined_call_operand.vmem [shape: f32[1,32], index: 10, kind: input, shape index: {}]   ;;  %s1121_s11 = inlined_call_operand.vmem [shape: f32[1,32], index: 11, kind: input, shape index: {}]   ;;  %s1122_s12 = inlined_call_operand.vmem [shape: f32[1,32], index: 12, kind: input, shape index: {}]   ;;  %s1123_s13 = inlined_call_operand.vmem [shape: f32[1,128], index: 13, kind: input, shape index: {}]   ;;  %s1124_s14 = inlined_call_operand.hbm [shape: f32[8,128], index: 14, kind: output, shape index: {0}]   ;;  %s1125_s15 = inlined_call_operand.vmem [shape: f32[8,32], index: 15, kind: output, shape index: {1}, may-alias: {2,15}]  }
   0x1   :  { %v51_v0 = vld [vmem:[%s1113_s3] sm:$0xff]  ;;  %v52_v1 = vld [vmem:[%s1113_s3 + $0x8] sm:$0xff]  ;;  %v53_v2 = vld [vmem:[%s1113_s3 + $0x10] sm:$0xff]  ;;  %704 = vmatprep.subr.bf16.mxu0 %v808_v3  ;;  %679 = vmatprep.mubr.msk.f32.mxu0 %vm809_vm0, %v810_v6 }
   0x2   :  { %v705_v4 = vpack.c.bf16 %v52_v1, %v51_v0  ;;  %v54_v5 = vld [vmem:[%s1113_s3 + $0x18] sm:$0xff]  ;;  %v137_v7 = vld [vmem:[%s1114_s4] sm:$0xff]  ;;  %710 = vmatprep.subr.bf16.mxu1 %v808_v3  ;;  %v138_v8 = vld [vmem:[%s1114_s4 + $0x8] sm:$0xff]  ;;  %690 = vmatprep.mubr.msk.f32.mxu1 %vm809_vm0, %v810_v6 }
   0x3   :  { %21 = vsyncpa [#allocation3], 0  ;;  %v708_v9 = vpack.c.bf16 %v54_v5, %v53_v2  ;;  %v711_v10 = vpack.c.bf16 %v138_v8, %v137_v7  ;;  %v50_v11 = vld [vmem:[%s1110_s0] sm:$0xff]  ;;  %vm62_vm1 = vcmask 261120   ;;  %v139_v12 = vld [vmem:[%s1114_s4 + $0x10] sm:$0xff]  ;;  %v811_v16 = vmov 2  }
   0x4   :  { %706 = vmatpush3.bf16.msra.mxu0 %v705_v4  ;;  %v140_v13 = vld [vmem:[%s1114_s4 + $0x18] sm:$0xff]  ;;  %v221_v15 = vld [vmem:[%s1111_s1] sm:$0xff]  ;;  %768 = vset.pattern.permute.xlu1 %v811_v16  ;;  %v812_v17 = vmov 0   ;;  %v813_v18 = vmov 3   ;;  %v814_v19 = vmov 1   ;;  %v815_v20 = vmov 4  }
   0x5   :  { %707 = vmatprep.subr.bf16.mxu0 %v808_v3  ;;  %712 = vmatpush3.bf16.msra.mxu1 %v711_v10  ;;  %v714_v14 = vpack.c.bf16 %v140_v13, %v139_v12  ;;  %v816_v21 = vmov 5   ;;  %v817_v22 = vmov 6   ;;  %v943_v23 = vld [vmem:[%s1112_s2] sm:$0xff]  ;;  %s818_s4 = smov 32   ;;  %v310_v29 = vld [vmem:[%s1115_s5 + $0x8] sm:$0xff]  ;;  %v312_v31 = vld [vmem:[%s1115_s5 + $0x18] sm:$0xff] }
   0x6   :  { %713 = vmatprep.subr.bf16.mxu1 %v808_v3  ;;  %766 = vset.pattern.permute.xlu0 %v812_v17  ;;  %v642_v24 = vld [vmem:[%s1117_s7] ss:$0 sm:$0xff]  ;;  %v314_v30 = vld [vmem:[%s1115_s5 + $0x28] sm:$0xff]  ;;  %v316_v33 = vld [vmem:[%s1115_s5 + $0x38] sm:$0xff]  ;;  %vm225_vm2 = vcmask 1042432   ;;  %vm240_vm3 = vcmask 1046528  }
   0x7   :  { %248 = vperm.xlu1 %768, %v221_v15   ;;  %230 = vperm.xlu0 %766, %v221_v15   ;;  %v716_v32 = vpack.c.bf16 %v314_v30, %v310_v29  ;;  %v309_v34 = vld [vmem:[%s1115_s5] sm:$0xff]  ;;  %v732_v36 = vpack.c.bf16 %v316_v33, %v312_v31  ;;  %v311_v38 = vld [vmem:[%s1115_s5 + $0x10] sm:$0xff]  ;;  %v318_v41 = vld [vmem:[%s1115_s5 + $0x48] sm:$0xff]  ;;  %vm251_vm4 = vcmask 1045504   ;;  %vm262_vm5 = vcmask 1044480   ;;  %s819_s0 = smov [#allocation2]  }
   0x8   :  { %709 = vmatpush3.bf16.msra.mxu0 %v708_v9  ;;  %v313_v35 = vld [vmem:[%s1115_s5 + $0x20] sm:$0xff]  ;;  %v315_v39 = vld [vmem:[%s1115_s5 + $0x30] sm:$0xff]  ;;  %v322_v42 = vld [vmem:[%s1115_s5 + $0x68] sm:$0xff]  ;;  %vm273_vm6 = vcmask 1043456   ;;  %vm294_vm7 = vcmask 1041408   ;;  %vm341_vm8 = vcmask 523264  }
   0x9   :  { %715 = vmatpush3.bf16.msra.mxu1 %v714_v14  ;;  %v718_v37 = vpack.c.bf16 %v313_v35, %v309_v34  ;;  %717 = vmatprep.subr.bf16.mxu0 %v716_v32  ;;  %v734_v40 = vpack.c.bf16 %v315_v39, %v311_v38  ;;  %v320_v43 = vld [vmem:[%s1115_s5 + $0x58] sm:$0xff]  ;;  %v720_v44 = vpack.c.bf16 %v322_v42, %v318_v41  ;;  %v317_v46 = vld [vmem:[%s1115_s5 + $0x40] sm:$0xff]  ;;  %v319_v50 = vld [vmem:[%s1115_s5 + $0x50] sm:$0xff]  ;;  %s630_s1 = sshll.u32 %s819_s0, 4  ;;  %s631_s1 = int_to_ptr.vmem [resolvable:$true] %s630_s1 }
   0xa   :  { %733 = vmatprep.subr.bf16.mxu1 %v732_v36  ;;  %v324_v45 = vld [vmem:[%s1115_s5 + $0x78] sm:$0xff]  ;;  %v321_v47 = vld [vmem:[%s1115_s5 + $0x60] sm:$0xff]  ;;  %v323_v51 = vld [vmem:[%s1115_s5 + $0x70] sm:$0xff]  ;;  %p789_p1 = scmp.lt.s32.totalorder %s631_s1, %s631_s1 }
   0xb   :  { %680 = vmatmul.mubr.msk.f32.vlgmr.msra.gmra.mrb[0].mxu0 %vm62_vm1, %v50_v11  ;;  %769 = vset.pattern.permute.xlu1 %v813_v18  ;;  %v736_v48 = vpack.c.bf16 %v324_v45, %v320_v43  ;;  %v722_v49 = vpack.c.bf16 %v321_v47, %v317_v46  ;;  %v738_v52 = vpack.c.bf16 %v323_v51, %v319_v50  ;;  %v326_v53 = vld [vmem:[%s1115_s5 + $0x88] sm:$0xff]  ;;  %v328_v55 = vld [vmem:[%s1115_s5 + $0x98] sm:$0xff]  ;;  %v325_v58 = vld [vmem:[%s1115_s5 + $0x80] sm:$0xff] }
   0xc   :  { %409 = vmatprep.mubr.f32.mxu0 %v810_v6  ;;  %767 = vset.pattern.permute.xlu0 %v814_v19  ;;  %v330_v54 = vld [vmem:[%s1115_s5 + $0xa8] sm:$0xff]  ;;  %v332_v57 = vld [vmem:[%s1115_s5 + $0xb8] sm:$0xff]  ;;  %v329_v59 = vld [vmem:[%s1115_s5 + $0xa0] sm:$0xff] }
   0xd   :  { %259 = vperm.xlu1 %769, %v221_v15   ;;  %235 = vperm.xlu0 %767, %v221_v15   ;;  %v724_v56 = vpack.c.bf16 %v330_v54, %v326_v53  ;;  %v740_v60 = vpack.c.bf16 %v332_v57, %v328_v55  ;;  %v726_v61 = vpack.c.bf16 %v329_v59, %v325_v58  ;;  %v327_v62 = vld [vmem:[%s1115_s5 + $0x90] sm:$0xff]  ;;  %v334_v0 = vld [vmem:[%s1115_s5 + $0xc8] sm:$0xff]  ;;  %v336_v4 = vld [vmem:[%s1115_s5 + $0xd8] sm:$0xff] }
   0xe   :  { %719 = vmatpush1.bf16.msra.mxu0 %v718_v37  ;;  %v331_v63 = vld [vmem:[%s1115_s5 + $0xb0] sm:$0xff]  ;;  %v338_v2 = vld [vmem:[%s1115_s5 + $0xe8] sm:$0xff]  ;;  %v340_v5 = vld [vmem:[%s1115_s5 + $0xf8] sm:$0xff] }
   0xf   :  { %721 = vmatprep.subr.bf16.mxu0 %v720_v44  ;;  %v742_v1 = vpack.c.bf16 %v331_v63, %v327_v62  ;;  %v728_v7 = vpack.c.bf16 %v338_v2, %v334_v0  ;;  %v744_v8 = vpack.c.bf16 %v340_v5, %v336_v4  ;;  %v333_v9 = vld [vmem:[%s1115_s5 + $0xc0] sm:$0xff]  ;;  %v335_v11 = vld [vmem:[%s1115_s5 + $0xd0] sm:$0xff]  ;;  %v540_v5 = vld [vmem:[%s1116_s6 + $0x8] sm:$0xff] }
  0x10   :  { %v337_v10 = vld [vmem:[%s1115_s5 + $0xe0] sm:$0xff]  ;;  %v339_v13 = vld [vmem:[%s1115_s5 + $0xf0] sm:$0xff] }
  0x11   :  { %770 = vset.pattern.permute.xlu1 %v815_v20  ;;  %771 = vset.pattern.permute.xlu0 %v816_v21  ;;  %v730_v12 = vpack.c.bf16 %v337_v10, %v333_v9  ;;  %v746_v14 = vpack.c.bf16 %v339_v13, %v335_v11  ;;  %v539_v4 = vld [vmem:[%s1116_s6] sm:$0xff] }
  0x12   :  { %270 = vperm.xlu1 %770, %v221_v15   ;;  %281 = vperm.xlu0 %771, %v221_v15   ;;  %v650_v13 = vld [vmem:[%s1120_s10] ss:$0 sm:$0xff] }
  0x13   :  { %723 = vmatpush1.bf16.msra.mxu0 %v722_v49 }
  0x14   :  { %725 = vmatprep.subr.bf16.mxu0 %v724_v56 }
  0x16   :  { %772 = vset.pattern.permute.xlu1 %v817_v22  ;;  %773 = vset.pattern.permute.xlu0 %v817_v22 }
  0x17   :  { %291 = vperm.xlu1 %772, %v221_v15   ;;  %727 = vmatpush1.bf16.msra.mxu0 %v726_v61  ;;  %v644_v15 = vld [vmem:[%s1118_s8] ss:$0 sm:$0xff] }
  0x18   :  { %729 = vmatprep.subr.bf16.mxu0 %v728_v7  ;;  %v542_v7 = vld [vmem:[%s1116_s6 + $0x18] sm:$0xff] }
  0x1b   :  { %305 = vrot.lane.b32.xlu1 %v943_v23, %s818_s4  ;;  %731 = vmatpush1.bf16.msra.mxu0 %v730_v12  ;;  %s784_s4 = scalar_lea.vmem %s631_s1, 128 }
  0x1c   :  { %748 = vmatprep.subr.bf16.mxu0 %v808_v3  ;;  %p785_p0 = scmp.ne.s32.totalorder %s631_s1, %s784_s4  ;;  %p790_p2 = scmp.lt.s32.totalorder %s784_s4, %s784_s4 }
  0x1e   :  { %p791_p3 = por %p790_p2, %p789_p1 }
  0x20   :  { %p792_p4 = pnand %p791_p3, %p785_p0 }
  0x86   :  { %v249_v16 = vpop.permute.xlu1 %248  ;;  %v231_v20 = vpop.permute.xlu0 %230 }
  0x8c   :  { %v260_v22 = vpop.permute.xlu1 %259  ;;  %v236_v36 = vpop.permute.xlu0 %235 }
  0x91   :  { %v271_v41 = vpop.permute.xlu1 %270 }
  0x96   :  { %v292_v56 = vpop.permute.xlu1 %291 }
  0x9a   :  { %v306_v0 = vpop.permute.xlu1 %305 }
  0xde   :  { %v132_v25 = vpop.f32.mrb[0].mxu0 }
  0xdf   :  { %v949_v26 = vadd.f32 %v642_v24, %v132_v25  ;;  %v681_v27 = vpop.f32.mrb[1].mxu0 }
  0xe1   :  { %v136_v28 = vmax.f32 %v949_v26, 0.0  ;;  %v541_v26 = vld [vmem:[%s1116_s6 + $0x10] sm:$0xff] }
  0xe3   :  { %691 = vmatmul.mubr.msk.f32.vlgmr.msra.gmra.mrb[0].mxu1 %vm62_vm1, %v136_v28 }
  0xe4   :  { %480 = vmatprep.mubr.f32.mxu1 %v810_v6  ;;  %735 = vmatpush1.bf16.msra.mxu1 %v734_v40 }
  0xe5   :  { %737 = vmatprep.subr.bf16.mxu1 %v736_v48 }
  0xe8   :  { %739 = vmatpush1.bf16.msra.mxu1 %v738_v52  ;;  %v282_v52 = vpop.permute.xlu0 %281 }
  0xe9   :  { %741 = vmatprep.subr.bf16.mxu1 %v740_v60 }
  0xec   :  { %743 = vmatpush1.bf16.msra.mxu1 %v742_v1 }
  0xed   :  { %745 = vmatprep.subr.bf16.mxu1 %v744_v8  ;;  %v752_v8 = vpack.c.bf16 %v542_v7, %v541_v26 }
  0xf0   :  { %747 = vmatpush1.bf16.msra.mxu1 %v746_v14 }
 0x1b6   :  { %v217_v17 = vpop.f32.mrb[0].mxu1 }
 0x1b7   :  { %v218_v18 = vadd.f32 %v644_v15, %v217_v17  ;;  %v692_v19 = vpop.f32.mrb[1].mxu1 }
 0x1b9   :  { %v223_v21 = vrot.slane %v218_v18, 5 }
 0x1bb   :  { %v226_v24 = vsel %vm225_vm2, 0.0, %v223_v21  ;;  %v227_v25 = vsel %vm225_vm2, %v223_v21, 0.0 }
 0x1bc   :  { %v264_v27 = vrot.slane %v227_v25, 3  ;;  %v241_v29 = vrot.slane %v226_v24, 1  ;;  %v242_v30 = vrot.slane %v227_v25, 1  ;;  %v252_v31 = vrot.slane %v226_v24, 2 }
 0x1bd   :  { %v253_v32 = vrot.slane %v227_v25, 2  ;;  %v263_v33 = vrot.slane %v226_v24, 3  ;;  %v274_v34 = vrot.slane %v226_v24, 4  ;;  %v275_v35 = vrot.slane %v227_v25, 4 }
 0x1be   :  { %v243_v37 = vsel %vm240_vm3, %v241_v29, %v242_v30  ;;  %v233_v39 = vmul.f32 %v231_v20, %v226_v24  ;;  %v284_v43 = vrot.slane %v226_v24, 5  ;;  %v285_v44 = vrot.slane %v227_v25, 5  ;;  %v653_v20 = vld [vmem:[%s1122_s12] ss:$0 sm:$0xff] }
 0x1bf   :  { %v254_v38 = vsel %vm251_vm4, %v252_v31, %v253_v32  ;;  %v245_v40 = vmul.f32 %v243_v37, %v236_v36  ;;  %v265_v42 = vsel %vm262_vm5, %v263_v33, %v264_v27  ;;  %v276_v47 = vsel %vm273_vm6, %v274_v34, %v275_v35  ;;  %v654_v37 = vld [vmem:[%s1123_s13] ss:$0 sm:$0xff] }
 0x1c0   :  { %v256_v46 = vmul.f32 %v254_v38, %v249_v16  ;;  %v295_v48 = vrot.slane %v226_v24, 6  ;;  %v296_v49 = vrot.slane %v227_v25, 6  ;;  %v267_v51 = vmul.f32 %v265_v42, %v260_v22  ;;  %v652_v22 = vld [vmem:[%s1121_s11] ss:$0 sm:$0xff] }
 0x1c1   :  { %v246_v45 = vadd.f32 %v245_v40, %v233_v39  ;;  %v286_v53 = vsel %vm225_vm2, %v284_v43, %v285_v44  ;;  %v278_v54 = vmul.f32 %v276_v47, %v271_v41 }
 0x1c2   :  { %v297_v57 = vsel %vm294_vm7, %v295_v48, %v296_v49  ;;  %v288_v59 = vmul.f32 %v286_v53, %v282_v52 }
 0x1c3   :  { %v257_v50 = vadd.f32 %v256_v46, %v246_v45  ;;  %v299_v60 = vmul.f32 %v297_v57, %v292_v56 }
 0x1c5   :  { %v268_v55 = vadd.f32 %v267_v51, %v257_v50 }
 0x1c7   :  { %v279_v58 = vadd.f32 %v278_v54, %v268_v55 }
 0x1c9   :  { %v289_v61 = vadd.f32 %v288_v59, %v279_v58 }
 0x1cb   :  { %v300_v62 = vadd.f32 %v299_v60, %v289_v61 }
 0x1cd   :  { %v301_v63 = vmax.f32 %v300_v62, 0.0 }
 0x1cf   :  { %v302_v1 = vadd.f32 %v301_v63, %v136_v28  ;;  %v749_v28 = vpack.c.bf16 %v540_v5, %v539_v4 }
 0x1d1   :  { %v308_v2 = vsel %vm62_vm1, %v302_v1, %v306_v0 }
 0x1d2   :  { %646 = vmatmul.mubr.msk.f32.vlgmr.msra.gmra.mrb[2].mxu0 %vm341_vm8, %v308_v2  ;;  %647 = vmatmul.mubr.msk.f32.vlgmr.msra.gmra.mrb[2].mxu1 %vm341_vm8, %v308_v2 }
 0x1d3   :  { %701 = vmatprep.mubr.msk.f32.mxu0 %vm809_vm0, %v810_v6  ;;  %750 = vmatpush3.bf16.msra.mxu0 %v749_v28  ;;  %v648_v6 = vld [vmem:[%s1119_s9] ss:$0 sm:$0xff] }
 0x1d4   :  { %751 = vmatprep.subr.bf16.mxu0 %v808_v3 }
 0x1d7   :  { %753 = vmatpush3.bf16.msra.mxu0 %v752_v8 }
 0x2a5   :  { %v411_v9 = vpop.f32.mrb[2].mxu0  ;;  %v482_v10 = vpop.f32.mrb[2].mxu1 }
 0x2a6   :  { %v494_v11 = vadd.f32 %v648_v6, %v411_v9  ;;  %v413_v12 = vpop.f32.mrb[3].mxu0  ;;  %v484_v14 = vpop.f32.mrb[3].mxu1  ;;  %v522_v27 = vadd.f32 %v652_v22, %v482_v10 }
 0x2a7   :  { %v508_v16 = vadd.f32 %v650_v13, %v413_v12  ;;  %v530_v24 = vadd.f32 %v653_v20, %v484_v14 }
 0x2a8   :  { %v649_v15 = vmul.f32 -1.442695, %v494_v11 }
 0x2a9   :  { %v651_v17 = vmul.f32 -1.442695, %v508_v16 }
 0x2aa   :  { %774 = vpow2.f32 %v649_v15 }
 0x2ab   :  { %776 = vpow2.f32 %v651_v17 }
 0x2b4   :  { %v775_v3 = vpop.eup %774 }
 0x2b5   :  { %v498_v18 = vadd.f32 1.0, %v775_v3  ;;  %v777_v19 = vpop.eup %776 }
 0x2b6   :  { %v512_v21 = vadd.f32 1.0, %v777_v19 }
 0x2b7   :  { %778 = vrcp.f32 %v498_v18 }
 0x2b8   :  { %780 = vrcp.f32 %v512_v21 }
 0x2c1   :  { %v779_v25 = vpop.eup %778 }
 0x2c2   :  { %v531_v29 = vmul.f32 %v779_v25, %v530_v24  ;;  %v781_v31 = vpop.eup %780 }
 0x2c3   :  { %v534_v32 = vsub.f32 1.0, %v781_v31  ;;  %v536_v35 = vmul.f32 %v781_v31, %v943_v23 }
 0x2c4   :  { %v532_v30 = vadd.f32 %v531_v29, %v522_v27 }
 0x2c6   :  { %782 = vtanh.f32 %v532_v30 }
 0x2d0   :  { %v783_v33 = vpop.eup %782 }
 0x2d1   :  { %v535_v34 = vmul.f32 %v783_v33, %v534_v32 }
 0x2d3   :  { %v537_v36 = vadd.f32 %v536_v35, %v535_v34 }
 0x2d5   :  { %538 = vst.msk [vmem:[%s1125_s15] sm:$0xff] %vm62_vm1, %v537_v36  ;;  %702 = vmatmul.mubr.msk.f32.vlgmr.msra.gmra.mrb[4].mxu0 %vm62_vm1, %v537_v36 }
 0x3a8   :  { %v619_v38 = vpop.f32.mrb[4].mxu0 }
 0x3a9   :  { %v620_v39 = vadd.f32 %v654_v37, %v619_v38  ;;  %v703_v40 = vpop.f32.mrb[5].mxu0 }
 0x3ab   :  { %623 = vst [vmem:[#allocation2] sm:$0xff] %v620_v39 }
 0x3ac   :  { %795 = shalt.err (!%p792_p4)
}
 0x3ad   :  { %s796_s23 = scalar_lea.hbm %s1124_s14, 128 }
 0x3ae   :  { %p797_p5 = scmp.ne.s32.totalorder %s1124_s14, %s796_s23  ;;  %p800_p6 = scmp.lt.u32.totalorder %s796_s23, %s1124_s14 }
 0x3b0   :  { %p802_p7 = pnand %p800_p6, %p797_p5 }
 0x3b2   :  { %805 = shalt.err (!%p802_p7)
}
 0x3b3   :  { %633 = dma.vmem_to_hbm [thread:$0]  %s631_s1, 128, %s1124_s14, [#allocation3]  }
 0x3b4   :  { %806 = dma.done.wait [#allocation3], 128  }
 0x3b5   :  { %807 = vsyncadd [#allocation3], 4294967168 }
 0x3b6   :  { %641 = vsyncpa [#allocation3], 1 }

</bundles_post_ra>
